<compile_context>
chip_gen: v6e
topology: v6e:2x2x1
jax: 0.10.0
libtpu: 0.0.40
codegen_flags: <defaults>
</compile_context>

<pallas_src>
import numpy as np
import jax
import jax.numpy as jnp
from jax.experimental import pallas as pl
from jax.experimental.pallas import tpu as pltpu

EPS = 0.1  # BatchNorm2d eps from the module


def _largest_divisor_leq(n, cap):
    cap = max(1, min(n, cap))
    for d in range(cap, 0, -1):
        if n % d == 0:
            return d
    return 1


def _hw_tile(hw, rows, target_bytes=2 << 20):
    """Largest multiple-of-128 divisor of hw with rows*tile*4 <= target (else hw)."""
    if rows * hw * 4 <= target_bytes:
        return hw
    best, d = None, 128
    cap = max(128, target_bytes // (rows * 4))
    while d <= min(hw, cap):
        if hw % d == 0:
            best = d
        d += 128
    return best if best is not None else hw


def flow_prediction(x_nchw, w_oihw, bias, gamma, beta):
    """[N, Cin, H, W] f32 -> [N, Cout, H, W] f32 (conv3x3 pad1 + train-mode BN)."""
    N, Cin, H, W = x_nchw.shape
    Cout = w_oihw.shape[0]
    HW = H * W
    inv_m = 1.0 / float(N * HW)

    # TODO(synk): re-add the conv bias if this module is ever run with eval-mode
    # (running) BN statistics; with batch statistics it cancels exactly.
    del bias

    # Free reshapes only (NCHW is already contiguous as [N*Cin, HW]).
    x_flat = x_nchw.reshape(N * Cin, HW).astype(jnp.float32)
    # [Cout, Cin, 3, 3] -> [Cout, ky, kx, Cin] -> [Cout, 9*Cin]  (tap-major, Cin-minor)
    w_flat = jnp.transpose(w_oihw, (0, 2, 3, 1)).reshape(Cout, 9 * Cin).astype(jnp.float32)
    gamma2 = gamma.reshape(Cout, 1).astype(jnp.float32)
    beta2 = beta.reshape(Cout, 1).astype(jnp.float32)
    # Tiny constant helpers (numpy, no runtime glue ops): p % W for the column
    # validity masks, and the per-row channel id for the flat [N*Cout, HW] view.
    col_pos = jnp.asarray((np.arange(HW, dtype=np.int32) % W).reshape(1, HW))
    row_ch = jnp.asarray((np.arange(N * Cout, dtype=np.int32) % Cout).reshape(N * Cout, 1))

    # --- tiling / megacore split ---------------------------------------------
    # keep the per-step x block <= ~512 KiB (the 9 rolled tap copies cost ~9x
    # that inside a step), comfortably within v7x's 32 MiB scoped VMEM.
    tile_n = _largest_divisor_leq(N, max(1, (512 * 1024) // (Cin * HW * 4)))
    nt = N // tile_n
    ng = 2 if nt % 2 == 0 else 1          # per-core partial stats (v7x megacore)
    npg = nt // ng
    # TODO(synk): for very large H*W also tile the HW axis in pass 1 (needs a +-W
    # halo per tile); not required at these sizes.

    # ---- pass 1: conv (one K=9*Cin contraction per image) + channel stats ----
    def conv_stats_kernel(x_ref, w_ref, cp_ref, y_ref, s_ref, ss_ref):
        @pl.when(pl.program_id(1) == 0)
        def _init():
            s_ref[...] = jnp.zeros_like(s_ref)
            ss_ref[...] = jnp.zeros_like(ss_ref)

        xf = x_ref[...]                                        # [tile_n*Cin, HW]
        pos = jax.lax.broadcasted_iota(jnp.int32, (1, HW), 1)  # flat pixel index
        cp = cp_ref[...]                                       # [1, HW] = p % W

        taps = []                                              # 9 rolled+masked copies
        for dy in range(3):
            for dx in range(3):
                oy, ox = dy - 1, dx - 1
                shift = oy * W + ox
                if shift == 0:
                    taps.append(xf)                            # center tap: no shift/mask
                    continue
                rolled = pltpu.roll(xf, (-shift) % HW, 1)      # lane rotate (XLU)
                # zero padding: row validity needs no div (0 <= p+oy*W < HW),
                # column validity uses the precomputed p % W. Pure VPU work.
                valid = ((pos + oy * W >= 0) & (pos + oy * W < HW) &
                         (cp + ox >= 0) & (cp + ox < W))
                taps.append(jnp.where(valid, rolled, 0.0))

        wmat = w_ref[...]                                      # [Cout, 9*Cin]
        s_acc = jnp.zeros((Cout, 1), jnp.float32)
        ss_acc = jnp.zeros((Cout, 1), jnp.float32)
        for n in range(tile_n):                                # taps shared across images
            xs_n = jnp.concatenate(
                [t[n * Cin:(n + 1) * Cin, :] for t in taps], axis=0)       # [9*Cin, HW]
            y_n = jnp.dot(wmat, xs_n, preferred_element_type=jnp.float32)  # [Cout, HW]
            y_ref[n] = y_n
            s_acc = s_acc + jnp.sum(y_n, axis=1, keepdims=True)
            ss_acc = ss_acc + jnp.sum(y_n * y_n, axis=1, keepdims=True)
        # TODO(synk): for huge N*H*W switch to Chan's parallel mean/M2 combine to
        # avoid E[y^2]-E[y]^2 cancellation; fine at these scales in f32.
        s_ref[...] += s_acc.reshape(1, Cout, 1)
        ss_ref[...] += ss_acc.reshape(1, Cout, 1)

    y3, ch_sum, ch_sumsq = pl.pallas_call(
        conv_stats_kernel,
        out_shape=(jax.ShapeDtypeStruct((N, Cout, HW), jnp.float32),
                   jax.ShapeDtypeStruct((ng, Cout, 1), jnp.float32),
                   jax.ShapeDtypeStruct((ng, Cout, 1), jnp.float32)),
        grid_spec=pltpu.PrefetchScalarGridSpec(
            num_scalar_prefetch=0,
            grid=(ng, npg),
            in_specs=[pl.BlockSpec((tile_n * Cin, HW), lambda g, n: (g * npg + n, 0)),
                      pl.BlockSpec((Cout, 9 * Cin), lambda g, n: (0, 0)),
                      pl.BlockSpec((1, HW), lambda g, n: (0, 0))],
            out_specs=[pl.BlockSpec((tile_n, Cout, HW), lambda g, n: (g * npg + n, 0, 0)),
                       pl.BlockSpec((1, Cout, 1), lambda g, n: (g, 0, 0)),
                       pl.BlockSpec((1, Cout, 1), lambda g, n: (g, 0, 0))]),
        compiler_params=pltpu.CompilerParams(
            dimension_semantics=("parallel", "arbitrary")),
    )(x_flat, w_flat, col_pos)

    # ---- pass 2: fused BN finalize + apply on sublane-dense [N*Cout, HW] -----
    rows = N * Cout
    y_rows = y3.reshape(rows, HW)                              # free reshape
    hw_blk = _hw_tile(HW, rows)

    def bn_apply_kernel(y_ref, s_ref, ss_ref, g_ref, b_ref, rc_ref, o_ref):
        s = jnp.sum(s_ref[...], axis=0)                        # combine megacore partials
        ss = jnp.sum(ss_ref[...], axis=0)
        mean = s * inv_m                                       # [Cout, 1]
        var = ss * inv_m - mean * mean                         # biased batch variance
        scale = g_ref[...] * jax.lax.rsqrt(var + EPS)
        shift = b_ref[...] - mean * scale
        # expand to per-row scale/shift (row = n*Cout + c); Cout is tiny, so this
        # is a few compares/FMAs recomputed per step -> grid stays "parallel".
        rc = rc_ref[...]                                       # [rows, 1] channel ids
        sr = jnp.zeros((rows, 1), jnp.float32)
        hr = jnp.zeros((rows, 1), jnp.float32)
        for c in range(Cout):
            m = (rc == c).astype(jnp.float32)
            sr = sr + m * scale[c:c + 1, :]
            hr = hr + m * shift[c:c + 1, :]
        o_ref[...] = y_ref[...] * sr + hr

    out_rows = pl.pallas_call(
        bn_apply_kernel,
        out_shape=jax.ShapeDtypeStruct((rows, HW), jnp.float32),
        grid_spec=pltpu.PrefetchScalarGridSpec(
            num_scalar_prefetch=0,
            grid=(HW // hw_blk,),
            in_specs=[pl.BlockSpec((rows, hw_blk), lambda j: (0, j)),
                      pl.BlockSpec((ng, Cout, 1), lambda j: (0, 0, 0)),
                      pl.BlockSpec((ng, Cout, 1), lambda j: (0, 0, 0)),
                      pl.BlockSpec((Cout, 1), lambda j: (0, 0)),
                      pl.BlockSpec((Cout, 1), lambda j: (0, 0)),
                      pl.BlockSpec((rows, 1), lambda j: (0, 0))],
            out_specs=pl.BlockSpec((rows, hw_blk), lambda j: (0, j))),
        compiler_params=pltpu.CompilerParams(
            dimension_semantics=("parallel",)),
    )(y_rows, ch_sum, ch_sumsq, gamma2, beta2, row_ch)

    return out_rows.reshape(N, Cout, H, W)


def reference(x_nchw, w_oihw, bias, gamma, beta):
    y = jax.lax.conv_general_dilated(
        x_nchw, w_oihw, window_strides=(1, 1), padding=((1, 1), (1, 1)),
        dimension_numbers=("NCHW", "OIHW", "NCHW"))
    y = y + bias.reshape(1, -1, 1, 1)
    mean = y.mean(axis=(0, 2, 3), keepdims=True)
    var = ((y - mean) ** 2).mean(axis=(0, 2, 3), keepdims=True)
    return gamma.reshape(1, -1, 1, 1) * (y - mean) / jnp.sqrt(var + EPS) \
        + beta.reshape(1, -1, 1, 1)


if __name__ == "__main__":
    key = jax.random.PRNGKey(0)
    k_x, k_w, k_b, k_g, k_be = jax.random.split(key, 5)

    N, Cin, Cout, H, W = 2, 16, 2, 16, 16

    x = jax.random.normal(k_x, (N, Cin, H, W), dtype=jnp.float32)
    # Conv2d(16->2, 3x3, pad=1) + BatchNorm2d(2, eps=0.1) parameters
    w = jax.random.normal(k_w, (Cout, Cin, 3, 3), dtype=jnp.float32) * 0.1
    b = jax.random.normal(k_b, (Cout,), dtype=jnp.float32) * 0.1
    gamma = 1.0 + 0.1 * jax.random.normal(k_g, (Cout,), dtype=jnp.float32)
    beta = 0.1 * jax.random.normal(k_be, (Cout,), dtype=jnp.float32)

    out = flow_prediction(x, w, b, gamma, beta)
    out = jax.block_until_ready(out)

    ref = jax.block_until_ready(reference(x, w, b, gamma, beta))
    assert out.shape == (N, Cout, H, W), out.shape
    assert jnp.allclose(out, ref, atol=1e-4, rtol=1e-4), \
        float(jnp.max(jnp.abs(out - ref)))

    print("KERNEL_OK")
</pallas_src>

<mosaic_0001>
module attributes {stable_mosaic.version = 11 : i64} {
  func.func @conv_stats_kernel(%arg0: i32, %arg1: i32, %arg2: memref<32x256xf32, #tpu.memory_space<vmem>>, %arg3: memref<2x144xf32, #tpu.memory_space<vmem>>, %arg4: memref<1x256xi32, #tpu.memory_space<vmem>>, %arg5: memref<2x2x256xf32, #tpu.memory_space<vmem>>, %arg6: memref<1x2x1xf32, #tpu.memory_space<vmem>>, %arg7: memref<1x2x1xf32, #tpu.memory_space<vmem>>) attributes {dimension_semantics = [#tpu.dimension_semantics<parallel>, #tpu.dimension_semantics<arbitrary>], iteration_bounds = array<i64: 1, 1>, scalar_prefetch = 0 : i64, scratch_operands = 0 : i64, tpu.core_type = #tpu.core_type<tc>, window_params = [{transform_indices = @transform_0, window_bounds = array<i64: 32, 256>}, {pipeline_mode = #tpu.pipeline_mode<synchronous>, transform_indices = @transform_1, window_bounds = array<i64: 2, 144>}, {pipeline_mode = #tpu.pipeline_mode<synchronous>, transform_indices = @transform_2, window_bounds = array<i64: 1, 256>}, {transform_indices = @transform_3, window_bounds = array<i64: 2, 2, 256>}, {transform_indices = @transform_4, window_bounds = array<i64: 1, 2, 1>}, {transform_indices = @transform_5, window_bounds = array<i64: 1, 2, 1>}]} {
    %c0_i32 = arith.constant 0 : i32
    %0 = arith.cmpi eq, %arg1, %c0_i32 : i32
    %1 = arith.extui %0 : i1 to i32
    %c0_i32_0 = arith.constant 0 : i32
    %2 = arith.cmpi ne, %1, %c0_i32_0 : i32
    scf.if %2 {
      %cst_99 = arith.constant 0.000000e+00 : f32
      %251 = vector.broadcast %cst_99 : f32 to vector<1x2x1xf32>
      %c0_100 = arith.constant 0 : index
      %c0_101 = arith.constant 0 : index
      %c0_102 = arith.constant 0 : index
      %252 = vector.load %arg6[%c0_100, %c0_101, %c0_102] : memref<1x2x1xf32, #tpu.memory_space<vmem>>, vector<1x2x1xf32>
      tpu.vector_store %arg6[%c0_100, %c0_101, %c0_102], %251 {strides = array<i32>} : memref<1x2x1xf32, #tpu.memory_space<vmem>>, vector<1x2x1xf32>,
      %cst_103 = arith.constant 0.000000e+00 : f32
      %253 = vector.broadcast %cst_103 : f32 to vector<1x2x1xf32>
      %c0_104 = arith.constant 0 : index
      %c0_105 = arith.constant 0 : index
      %c0_106 = arith.constant 0 : index
      %254 = vector.load %arg7[%c0_104, %c0_105, %c0_106] : memref<1x2x1xf32, #tpu.memory_space<vmem>>, vector<1x2x1xf32>
      tpu.vector_store %arg7[%c0_104, %c0_105, %c0_106], %253 {strides = array<i32>} : memref<1x2x1xf32, #tpu.memory_space<vmem>>, vector<1x2x1xf32>,
    } else {
    }
    %c0 = arith.constant 0 : index
    %c0_1 = arith.constant 0 : index
    %3 = vector.load %arg2[%c0, %c0_1] : memref<32x256xf32, #tpu.memory_space<vmem>>, vector<32x256xf32>
    %4 = tpu.iota {dimensions = array<i32: 1>} : vector<1x256xi32>
    %c0_2 = arith.constant 0 : index
    %c0_3 = arith.constant 0 : index
    %5 = vector.load %arg4[%c0_2, %c0_3] : memref<1x256xi32, #tpu.memory_space<vmem>>, vector<1x256xi32>
    %c17_i32 = arith.constant 17 : i32
    %6 = tpu.dynamic_rotate %3 by %c17_i32 dim 1 : vector<32x256xf32>, i32 -> vector<32x256xf32>
    %c-16_i32 = arith.constant -16 : i32
    %7 = vector.broadcast %c-16_i32 : i32 to vector<1x256xi32>
    %8 = arith.addi %4, %7 : vector<1x256xi32>
    %c0_i32_4 = arith.constant 0 : i32
    %9 = vector.broadcast %c0_i32_4 : i32 to vector<1x256xi32>
    %10 = arith.cmpi sge, %8, %9 : vector<1x256xi32>
    %c-16_i32_5 = arith.constant -16 : i32
    %11 = vector.broadcast %c-16_i32_5 : i32 to vector<1x256xi32>
    %12 = arith.addi %4, %11 : vector<1x256xi32>
    %c256_i32 = arith.constant 256 : i32
    %13 = vector.broadcast %c256_i32 : i32 to vector<1x256xi32>
    %14 = arith.cmpi slt, %12, %13 : vector<1x256xi32>
    %15 = arith.andi %10, %14 : vector<1x256xi1>
    %c-1_i32 = arith.constant -1 : i32
    %16 = vector.broadcast %c-1_i32 : i32 to vector<1x256xi32>
    %17 = arith.addi %5, %16 : vector<1x256xi32>
    %c0_i32_6 = arith.constant 0 : i32
    %18 = vector.broadcast %c0_i32_6 : i32 to vector<1x256xi32>
    %19 = arith.cmpi sge, %17, %18 : vector<1x256xi32>
    %20 = arith.andi %15, %19 : vector<1x256xi1>
    %c-1_i32_7 = arith.constant -1 : i32
    %21 = vector.broadcast %c-1_i32_7 : i32 to vector<1x256xi32>
    %22 = arith.addi %5, %21 : vector<1x256xi32>
    %c16_i32 = arith.constant 16 : i32
    %23 = vector.broadcast %c16_i32 : i32 to vector<1x256xi32>
    %24 = arith.cmpi slt, %22, %23 : vector<1x256xi32>
    %25 = arith.andi %20, %24 : vector<1x256xi1>
    %cst = arith.constant 0.000000e+00 : f32
    %26 = vector.shape_cast %25 : vector<1x256xi1> to vector<1x256xi1>
    %27 = vector.broadcast %26 : vector<1x256xi1> to vector<32x256xi1>
    %28 = vector.broadcast %cst : f32 to vector<32x256xf32>
    %29 = arith.select %27, %6, %28 : vector<32x256xi1>, vector<32x256xf32>
    %c16_i32_8 = arith.constant 16 : i32
    %30 = tpu.dynamic_rotate %3 by %c16_i32_8 dim 1 : vector<32x256xf32>, i32 -> vector<32x256xf32>
    %c-16_i32_9 = arith.constant -16 : i32
    %31 = vector.broadcast %c-16_i32_9 : i32 to vector<1x256xi32>
    %32 = arith.addi %4, %31 : vector<1x256xi32>
    %c0_i32_10 = arith.constant 0 : i32
    %33 = vector.broadcast %c0_i32_10 : i32 to vector<1x256xi32>
    %34 = arith.cmpi sge, %32, %33 : vector<1x256xi32>
    %c-16_i32_11 = arith.constant -16 : i32
    %35 = vector.broadcast %c-16_i32_11 : i32 to vector<1x256xi32>
    %36 = arith.addi %4, %35 : vector<1x256xi32>
    %c256_i32_12 = arith.constant 256 : i32
    %37 = vector.broadcast %c256_i32_12 : i32 to vector<1x256xi32>
    %38 = arith.cmpi slt, %36, %37 : vector<1x256xi32>
    %39 = arith.andi %34, %38 : vector<1x256xi1>
    %c0_i32_13 = arith.constant 0 : i32
    %40 = vector.broadcast %c0_i32_13 : i32 to vector<1x256xi32>
    %41 = arith.addi %5, %40 : vector<1x256xi32>
    %c0_i32_14 = arith.constant 0 : i32
    %42 = vector.broadcast %c0_i32_14 : i32 to vector<1x256xi32>
    %43 = arith.cmpi sge, %41, %42 : vector<1x256xi32>
    %44 = arith.andi %39, %43 : vector<1x256xi1>
    %c0_i32_15 = arith.constant 0 : i32
    %45 = vector.broadcast %c0_i32_15 : i32 to vector<1x256xi32>
    %46 = arith.addi %5, %45 : vector<1x256xi32>
    %c16_i32_16 = arith.constant 16 : i32
    %47 = vector.broadcast %c16_i32_16 : i32 to vector<1x256xi32>
    %48 = arith.cmpi slt, %46, %47 : vector<1x256xi32>
    %49 = arith.andi %44, %48 : vector<1x256xi1>
    %cst_17 = arith.constant 0.000000e+00 : f32
    %50 = vector.shape_cast %49 : vector<1x256xi1> to vector<1x256xi1>
    %51 = vector.broadcast %50 : vector<1x256xi1> to vector<32x256xi1>
    %52 = vector.broadcast %cst_17 : f32 to vector<32x256xf32>
    %53 = arith.select %51, %30, %52 : vector<32x256xi1>, vector<32x256xf32>
    %c15_i32 = arith.constant 15 : i32
    %54 = tpu.dynamic_rotate %3 by %c15_i32 dim 1 : vector<32x256xf32>, i32 -> vector<32x256xf32>
    %c-16_i32_18 = arith.constant -16 : i32
    %55 = vector.broadcast %c-16_i32_18 : i32 to vector<1x256xi32>
    %56 = arith.addi %4, %55 : vector<1x256xi32>
    %c0_i32_19 = arith.constant 0 : i32
    %57 = vector.broadcast %c0_i32_19 : i32 to vector<1x256xi32>
    %58 = arith.cmpi sge, %56, %57 : vector<1x256xi32>
    %c-16_i32_20 = arith.constant -16 : i32
    %59 = vector.broadcast %c-16_i32_20 : i32 to vector<1x256xi32>
    %60 = arith.addi %4, %59 : vector<1x256xi32>
    %c256_i32_21 = arith.constant 256 : i32
    %61 = vector.broadcast %c256_i32_21 : i32 to vector<1x256xi32>
    %62 = arith.cmpi slt, %60, %61 : vector<1x256xi32>
    %63 = arith.andi %58, %62 : vector<1x256xi1>
    %c1_i32 = arith.constant 1 : i32
    %64 = vector.broadcast %c1_i32 : i32 to vector<1x256xi32>
    %65 = arith.addi %5, %64 : vector<1x256xi32>
    %c0_i32_22 = arith.constant 0 : i32
    %66 = vector.broadcast %c0_i32_22 : i32 to vector<1x256xi32>
    %67 = arith.cmpi sge, %65, %66 : vector<1x256xi32>
    %68 = arith.andi %63, %67 : vector<1x256xi1>
    %c1_i32_23 = arith.constant 1 : i32
    %69 = vector.broadcast %c1_i32_23 : i32 to vector<1x256xi32>
    %70 = arith.addi %5, %69 : vector<1x256xi32>
    %c16_i32_24 = arith.constant 16 : i32
    %71 = vector.broadcast %c16_i32_24 : i32 to vector<1x256xi32>
    %72 = arith.cmpi slt, %70, %71 : vector<1x256xi32>
    %73 = arith.andi %68, %72 : vector<1x256xi1>
    %cst_25 = arith.constant 0.000000e+00 : f32
    %74 = vector.shape_cast %73 : vector<1x256xi1> to vector<1x256xi1>
    %75 = vector.broadcast %74 : vector<1x256xi1> to vector<32x256xi1>
    %76 = vector.broadcast %cst_25 : f32 to vector<32x256xf32>
    %77 = arith.select %75, %54, %76 : vector<32x256xi1>, vector<32x256xf32>
    %c1_i32_26 = arith.constant 1 : i32
    %78 = tpu.dynamic_rotate %3 by %c1_i32_26 dim 1 : vector<32x256xf32>, i32 -> vector<32x256xf32>
    %c0_i32_27 = arith.constant 0 : i32
    %79 = vector.broadcast %c0_i32_27 : i32 to vector<1x256xi32>
    %80 = arith.addi %4, %79 : vector<1x256xi32>
    %c0_i32_28 = arith.constant 0 : i32
    %81 = vector.broadcast %c0_i32_28 : i32 to vector<1x256xi32>
    %82 = arith.cmpi sge, %80, %81 : vector<1x256xi32>
    %c0_i32_29 = arith.constant 0 : i32
    %83 = vector.broadcast %c0_i32_29 : i32 to vector<1x256xi32>
    %84 = arith.addi %4, %83 : vector<1x256xi32>
    %c256_i32_30 = arith.constant 256 : i32
    %85 = vector.broadcast %c256_i32_30 : i32 to vector<1x256xi32>
    %86 = arith.cmpi slt, %84, %85 : vector<1x256xi32>
    %87 = arith.andi %82, %86 : vector<1x256xi1>
    %c-1_i32_31 = arith.constant -1 : i32
    %88 = vector.broadcast %c-1_i32_31 : i32 to vector<1x256xi32>
    %89 = arith.addi %5, %88 : vector<1x256xi32>
    %c0_i32_32 = arith.constant 0 : i32
    %90 = vector.broadcast %c0_i32_32 : i32 to vector<1x256xi32>
    %91 = arith.cmpi sge, %89, %90 : vector<1x256xi32>
    %92 = arith.andi %87, %91 : vector<1x256xi1>
    %c-1_i32_33 = arith.constant -1 : i32
    %93 = vector.broadcast %c-1_i32_33 : i32 to vector<1x256xi32>
    %94 = arith.addi %5, %93 : vector<1x256xi32>
    %c16_i32_34 = arith.constant 16 : i32
    %95 = vector.broadcast %c16_i32_34 : i32 to vector<1x256xi32>
    %96 = arith.cmpi slt, %94, %95 : vector<1x256xi32>
    %97 = arith.andi %92, %96 : vector<1x256xi1>
    %cst_35 = arith.constant 0.000000e+00 : f32
    %98 = vector.shape_cast %97 : vector<1x256xi1> to vector<1x256xi1>
    %99 = vector.broadcast %98 : vector<1x256xi1> to vector<32x256xi1>
    %100 = vector.broadcast %cst_35 : f32 to vector<32x256xf32>
    %101 = arith.select %99, %78, %100 : vector<32x256xi1>, vector<32x256xf32>
    %c255_i32 = arith.constant 255 : i32
    %102 = tpu.dynamic_rotate %3 by %c255_i32 dim 1 : vector<32x256xf32>, i32 -> vector<32x256xf32>
    %c0_i32_36 = arith.constant 0 : i32
    %103 = vector.broadcast %c0_i32_36 : i32 to vector<1x256xi32>
    %104 = arith.addi %4, %103 : vector<1x256xi32>
    %c0_i32_37 = arith.constant 0 : i32
    %105 = vector.broadcast %c0_i32_37 : i32 to vector<1x256xi32>
    %106 = arith.cmpi sge, %104, %105 : vector<1x256xi32>
    %c0_i32_38 = arith.constant 0 : i32
    %107 = vector.broadcast %c0_i32_38 : i32 to vector<1x256xi32>
    %108 = arith.addi %4, %107 : vector<1x256xi32>
    %c256_i32_39 = arith.constant 256 : i32
    %109 = vector.broadcast %c256_i32_39 : i32 to vector<1x256xi32>
    %110 = arith.cmpi slt, %108, %109 : vector<1x256xi32>
    %111 = arith.andi %106, %110 : vector<1x256xi1>
    %c1_i32_40 = arith.constant 1 : i32
    %112 = vector.broadcast %c1_i32_40 : i32 to vector<1x256xi32>
    %113 = arith.addi %5, %112 : vector<1x256xi32>
    %c0_i32_41 = arith.constant 0 : i32
    %114 = vector.broadcast %c0_i32_41 : i32 to vector<1x256xi32>
    %115 = arith.cmpi sge, %113, %114 : vector<1x256xi32>
    %116 = arith.andi %111, %115 : vector<1x256xi1>
    %c1_i32_42 = arith.constant 1 : i32
    %117 = vector.broadcast %c1_i32_42 : i32 to vector<1x256xi32>
    %118 = arith.addi %5, %117 : vector<1x256xi32>
    %c16_i32_43 = arith.constant 16 : i32
    %119 = vector.broadcast %c16_i32_43 : i32 to vector<1x256xi32>
    %120 = arith.cmpi slt, %118, %119 : vector<1x256xi32>
    %121 = arith.andi %116, %120 : vector<1x256xi1>
    %cst_44 = arith.constant 0.000000e+00 : f32
    %122 = vector.shape_cast %121 : vector<1x256xi1> to vector<1x256xi1>
    %123 = vector.broadcast %122 : vector<1x256xi1> to vector<32x256xi1>
    %124 = vector.broadcast %cst_44 : f32 to vector<32x256xf32>
    %125 = arith.select %123, %102, %124 : vector<32x256xi1>, vector<32x256xf32>
    %c241_i32 = arith.constant 241 : i32
    %126 = tpu.dynamic_rotate %3 by %c241_i32 dim 1 : vector<32x256xf32>, i32 -> vector<32x256xf32>
    %c16_i32_45 = arith.constant 16 : i32
    %127 = vector.broadcast %c16_i32_45 : i32 to vector<1x256xi32>
    %128 = arith.addi %4, %127 : vector<1x256xi32>
    %c0_i32_46 = arith.constant 0 : i32
    %129 = vector.broadcast %c0_i32_46 : i32 to vector<1x256xi32>
    %130 = arith.cmpi sge, %128, %129 : vector<1x256xi32>
    %c16_i32_47 = arith.constant 16 : i32
    %131 = vector.broadcast %c16_i32_47 : i32 to vector<1x256xi32>
    %132 = arith.addi %4, %131 : vector<1x256xi32>
    %c256_i32_48 = arith.constant 256 : i32
    %133 = vector.broadcast %c256_i32_48 : i32 to vector<1x256xi32>
    %134 = arith.cmpi slt, %132, %133 : vector<1x256xi32>
    %135 = arith.andi %130, %134 : vector<1x256xi1>
    %c-1_i32_49 = arith.constant -1 : i32
    %136 = vector.broadcast %c-1_i32_49 : i32 to vector<1x256xi32>
    %137 = arith.addi %5, %136 : vector<1x256xi32>
    %c0_i32_50 = arith.constant 0 : i32
    %138 = vector.broadcast %c0_i32_50 : i32 to vector<1x256xi32>
    %139 = arith.cmpi sge, %137, %138 : vector<1x256xi32>
    %140 = arith.andi %135, %139 : vector<1x256xi1>
    %c-1_i32_51 = arith.constant -1 : i32
    %141 = vector.broadcast %c-1_i32_51 : i32 to vector<1x256xi32>
    %142 = arith.addi %5, %141 : vector<1x256xi32>
    %c16_i32_52 = arith.constant 16 : i32
    %143 = vector.broadcast %c16_i32_52 : i32 to vector<1x256xi32>
    %144 = arith.cmpi slt, %142, %143 : vector<1x256xi32>
    %145 = arith.andi %140, %144 : vector<1x256xi1>
    %cst_53 = arith.constant 0.000000e+00 : f32
    %146 = vector.shape_cast %145 : vector<1x256xi1> to vector<1x256xi1>
    %147 = vector.broadcast %146 : vector<1x256xi1> to vector<32x256xi1>
    %148 = vector.broadcast %cst_53 : f32 to vector<32x256xf32>
    %149 = arith.select %147, %126, %148 : vector<32x256xi1>, vector<32x256xf32>
    %c240_i32 = arith.constant 240 : i32
    %150 = tpu.dynamic_rotate %3 by %c240_i32 dim 1 : vector<32x256xf32>, i32 -> vector<32x256xf32>
    %c16_i32_54 = arith.constant 16 : i32
    %151 = vector.broadcast %c16_i32_54 : i32 to vector<1x256xi32>
    %152 = arith.addi %4, %151 : vector<1x256xi32>
    %c0_i32_55 = arith.constant 0 : i32
    %153 = vector.broadcast %c0_i32_55 : i32 to vector<1x256xi32>
    %154 = arith.cmpi sge, %152, %153 : vector<1x256xi32>
    %c16_i32_56 = arith.constant 16 : i32
    %155 = vector.broadcast %c16_i32_56 : i32 to vector<1x256xi32>
    %156 = arith.addi %4, %155 : vector<1x256xi32>
    %c256_i32_57 = arith.constant 256 : i32
    %157 = vector.broadcast %c256_i32_57 : i32 to vector<1x256xi32>
    %158 = arith.cmpi slt, %156, %157 : vector<1x256xi32>
    %159 = arith.andi %154, %158 : vector<1x256xi1>
    %c0_i32_58 = arith.constant 0 : i32
    %160 = vector.broadcast %c0_i32_58 : i32 to vector<1x256xi32>
    %161 = arith.addi %5, %160 : vector<1x256xi32>
    %c0_i32_59 = arith.constant 0 : i32
    %162 = vector.broadcast %c0_i32_59 : i32 to vector<1x256xi32>
    %163 = arith.cmpi sge, %161, %162 : vector<1x256xi32>
    %164 = arith.andi %159, %163 : vector<1x256xi1>
    %c0_i32_60 = arith.constant 0 : i32
    %165 = vector.broadcast %c0_i32_60 : i32 to vector<1x256xi32>
    %166 = arith.addi %5, %165 : vector<1x256xi32>
    %c16_i32_61 = arith.constant 16 : i32
    %167 = vector.broadcast %c16_i32_61 : i32 to vector<1x256xi32>
    %168 = arith.cmpi slt, %166, %167 : vector<1x256xi32>
    %169 = arith.andi %164, %168 : vector<1x256xi1>
    %cst_62 = arith.constant 0.000000e+00 : f32
    %170 = vector.shape_cast %169 : vector<1x256xi1> to vector<1x256xi1>
    %171 = vector.broadcast %170 : vector<1x256xi1> to vector<32x256xi1>
    %172 = vector.broadcast %cst_62 : f32 to vector<32x256xf32>
    %173 = arith.select %171, %150, %172 : vector<32x256xi1>, vector<32x256xf32>
    %c239_i32 = arith.constant 239 : i32
    %174 = tpu.dynamic_rotate %3 by %c239_i32 dim 1 : vector<32x256xf32>, i32 -> vector<32x256xf32>
    %c16_i32_63 = arith.constant 16 : i32
    %175 = vector.broadcast %c16_i32_63 : i32 to vector<1x256xi32>
    %176 = arith.addi %4, %175 : vector<1x256xi32>
    %c0_i32_64 = arith.constant 0 : i32
    %177 = vector.broadcast %c0_i32_64 : i32 to vector<1x256xi32>
    %178 = arith.cmpi sge, %176, %177 : vector<1x256xi32>
    %c16_i32_65 = arith.constant 16 : i32
    %179 = vector.broadcast %c16_i32_65 : i32 to vector<1x256xi32>
    %180 = arith.addi %4, %179 : vector<1x256xi32>
    %c256_i32_66 = arith.constant 256 : i32
    %181 = vector.broadcast %c256_i32_66 : i32 to vector<1x256xi32>
    %182 = arith.cmpi slt, %180, %181 : vector<1x256xi32>
    %183 = arith.andi %178, %182 : vector<1x256xi1>
    %c1_i32_67 = arith.constant 1 : i32
    %184 = vector.broadcast %c1_i32_67 : i32 to vector<1x256xi32>
    %185 = arith.addi %5, %184 : vector<1x256xi32>
    %c0_i32_68 = arith.constant 0 : i32
    %186 = vector.broadcast %c0_i32_68 : i32 to vector<1x256xi32>
    %187 = arith.cmpi sge, %185, %186 : vector<1x256xi32>
    %188 = arith.andi %183, %187 : vector<1x256xi1>
    %c1_i32_69 = arith.constant 1 : i32
    %189 = vector.broadcast %c1_i32_69 : i32 to vector<1x256xi32>
    %190 = arith.addi %5, %189 : vector<1x256xi32>
    %c16_i32_70 = arith.constant 16 : i32
    %191 = vector.broadcast %c16_i32_70 : i32 to vector<1x256xi32>
    %192 = arith.cmpi slt, %190, %191 : vector<1x256xi32>
    %193 = arith.andi %188, %192 : vector<1x256xi1>
    %cst_71 = arith.constant 0.000000e+00 : f32
    %194 = vector.shape_cast %193 : vector<1x256xi1> to vector<1x256xi1>
    %195 = vector.broadcast %194 : vector<1x256xi1> to vector<32x256xi1>
    %196 = vector.broadcast %cst_71 : f32 to vector<32x256xf32>
    %197 = arith.select %195, %174, %196 : vector<32x256xi1>, vector<32x256xf32>
    %c0_72 = arith.constant 0 : index
    %c0_73 = arith.constant 0 : index
    %198 = vector.load %arg3[%c0_72, %c0_73] : memref<2x144xf32, #tpu.memory_space<vmem>>, vector<2x144xf32>
    %cst_74 = arith.constant 0.000000e+00 : f32
    %199 = vector.broadcast %cst_74 : f32 to vector<2x1xf32>
    %cst_75 = arith.constant 0.000000e+00 : f32
    %200 = vector.broadcast %cst_75 : f32 to vector<2x1xf32>
    %201 = vector.extract_strided_slice %29 {offsets = [0, 0], sizes = [16, 256], strides = [1, 1]} : vector<32x256xf32> to vector<16x256xf32>
    %202 = vector.extract_strided_slice %53 {offsets = [0, 0], sizes = [16, 256], strides = [1, 1]} : vector<32x256xf32> to vector<16x256xf32>
    %203 = vector.extract_strided_slice %77 {offsets = [0, 0], sizes = [16, 256], strides = [1, 1]} : vector<32x256xf32> to vector<16x256xf32>
    %204 = vector.extract_strided_slice %101 {offsets = [0, 0], sizes = [16, 256], strides = [1, 1]} : vector<32x256xf32> to vector<16x256xf32>
    %205 = vector.extract_strided_slice %3 {offsets = [0, 0], sizes = [16, 256], strides = [1, 1]} : vector<32x256xf32> to vector<16x256xf32>
    %206 = vector.extract_strided_slice %125 {offsets = [0, 0], sizes = [16, 256], strides = [1, 1]} : vector<32x256xf32> to vector<16x256xf32>
    %207 = vector.extract_strided_slice %149 {offsets = [0, 0], sizes = [16, 256], strides = [1, 1]} : vector<32x256xf32> to vector<16x256xf32>
    %208 = vector.extract_strided_slice %173 {offsets = [0, 0], sizes = [16, 256], strides = [1, 1]} : vector<32x256xf32> to vector<16x256xf32>
    %209 = vector.extract_strided_slice %197 {offsets = [0, 0], sizes = [16, 256], strides = [1, 1]} : vector<32x256xf32> to vector<16x256xf32>
    %210 = tpu.concatenate %201, %202, %203, %204, %205, %206, %207, %208, %209 in 0 : vector<16x256xf32>, vector<16x256xf32>, vector<16x256xf32>, vector<16x256xf32>, vector<16x256xf32>, vector<16x256xf32>, vector<16x256xf32>, vector<16x256xf32>, vector<16x256xf32> -> vector<144x256xf32>
    %cst_76 = arith.constant dense<0.000000e+00> : vector<2x256xf32>
    %211 = tpu.matmul %198, %210, %cst_76 {dimension_numbers = #tpu.dot_dimension_numbers<[1], [0], [0], [1], [0, 0, 1, 1], [], []>} : vector<2x144xf32>, vector<144x256xf32>, vector<2x256xf32> -> vector<2x256xf32>
    %c0_77 = arith.constant 0 : index
    %c0_78 = arith.constant 0 : index
    %c0_79 = arith.constant 0 : index
    %212 = vector.load %arg5[%c0_77, %c0_78, %c0_79] : memref<2x2x256xf32, #tpu.memory_space<vmem>>, vector<1x2x256xf32>
    %213 = vector.shape_cast %212 : vector<1x2x256xf32> to vector<2x256xf32>
    %214 = vector.shape_cast %211 : vector<2x256xf32> to vector<1x2x256xf32>
    tpu.vector_store %arg5[%c0_77, %c0_78, %c0_79], %214 {strides = array<i32>} : memref<2x2x256xf32, #tpu.memory_space<vmem>>, vector<1x2x256xf32>,
    %cst_80 = arith.constant dense<0.000000e+00> : vector<2xf32>
    %215 = vector.multi_reduction <add>, %211, %cst_80 [1] : vector<2x256xf32> to vector<2xf32>
    %216 = vector.shape_cast %215 : vector<2xf32> to vector<2x1xf32>
    %217 = arith.addf %199, %216 : vector<2x1xf32>
    %218 = arith.mulf %211, %211 : vector<2x256xf32>
    %cst_81 = arith.constant dense<0.000000e+00> : vector<2xf32>
    %219 = vector.multi_reduction <add>, %218, %cst_81 [1] : vector<2x256xf32> to vector<2xf32>
    %220 = vector.shape_cast %219 : vector<2xf32> to vector<2x1xf32>
    %221 = arith.addf %200, %220 : vector<2x1xf32>
    %222 = vector.extract_strided_slice %29 {offsets = [16, 0], sizes = [16, 256], strides = [1, 1]} : vector<32x256xf32> to vector<16x256xf32>
    %223 = vector.extract_strided_slice %53 {offsets = [16, 0], sizes = [16, 256], strides = [1, 1]} : vector<32x256xf32> to vector<16x256xf32>
    %224 = vector.extract_strided_slice %77 {offsets = [16, 0], sizes = [16, 256], strides = [1, 1]} : vector<32x256xf32> to vector<16x256xf32>
    %225 = vector.extract_strided_slice %101 {offsets = [16, 0], sizes = [16, 256], strides = [1, 1]} : vector<32x256xf32> to vector<16x256xf32>
    %226 = vector.extract_strided_slice %3 {offsets = [16, 0], sizes = [16, 256], strides = [1, 1]} : vector<32x256xf32> to vector<16x256xf32>
    %227 = vector.extract_strided_slice %125 {offsets = [16, 0], sizes = [16, 256], strides = [1, 1]} : vector<32x256xf32> to vector<16x256xf32>
    %228 = vector.extract_strided_slice %149 {offsets = [16, 0], sizes = [16, 256], strides = [1, 1]} : vector<32x256xf32> to vector<16x256xf32>
    %229 = vector.extract_strided_slice %173 {offsets = [16, 0], sizes = [16, 256], strides = [1, 1]} : vector<32x256xf32> to vector<16x256xf32>
    %230 = vector.extract_strided_slice %197 {offsets = [16, 0], sizes = [16, 256], strides = [1, 1]} : vector<32x256xf32> to vector<16x256xf32>
    %231 = tpu.concatenate %222, %223, %224, %225, %226, %227, %228, %229, %230 in 0 : vector<16x256xf32>, vector<16x256xf32>, vector<16x256xf32>, vector<16x256xf32>, vector<16x256xf32>, vector<16x256xf32>, vector<16x256xf32>, vector<16x256xf32>, vector<16x256xf32> -> vector<144x256xf32>
    %cst_82 = arith.constant dense<0.000000e+00> : vector<2x256xf32>
    %232 = tpu.matmul %198, %231, %cst_82 {dimension_numbers = #tpu.dot_dimension_numbers<[1], [0], [0], [1], [0, 0, 1, 1], [], []>} : vector<2x144xf32>, vector<144x256xf32>, vector<2x256xf32> -> vector<2x256xf32>
    %c1 = arith.constant 1 : index
    %c0_83 = arith.constant 0 : index
    %c0_84 = arith.constant 0 : index
    %233 = vector.load %arg5[%c1, %c0_83, %c0_84] : memref<2x2x256xf32, #tpu.memory_space<vmem>>, vector<1x2x256xf32>
    %234 = vector.shape_cast %233 : vector<1x2x256xf32> to vector<2x256xf32>
    %235 = vector.shape_cast %232 : vector<2x256xf32> to vector<1x2x256xf32>
    tpu.vector_store %arg5[%c1, %c0_83, %c0_84], %235 {strides = array<i32>} : memref<2x2x256xf32, #tpu.memory_space<vmem>>, vector<1x2x256xf32>,
    %cst_85 = arith.constant dense<0.000000e+00> : vector<2xf32>
    %236 = vector.multi_reduction <add>, %232, %cst_85 [1] : vector<2x256xf32> to vector<2xf32>
    %237 = vector.shape_cast %236 : vector<2xf32> to vector<2x1xf32>
    %238 = arith.addf %217, %237 : vector<2x1xf32>
    %239 = arith.mulf %232, %232 : vector<2x256xf32>
    %cst_86 = arith.constant dense<0.000000e+00> : vector<2xf32>
    %240 = vector.multi_reduction <add>, %239, %cst_86 [1] : vector<2x256xf32> to vector<2xf32>
    %241 = vector.shape_cast %240 : vector<2xf32> to vector<2x1xf32>
    %242 = arith.addf %221, %241 : vector<2x1xf32>
    %c0_87 = arith.constant 0 : index
    %c0_88 = arith.constant 0 : index
    %c0_89 = arith.constant 0 : index
    %243 = vector.load %arg6[%c0_87, %c0_88, %c0_89] : memref<1x2x1xf32, #tpu.memory_space<vmem>>, vector<1x2x1xf32>
    %244 = vector.shape_cast %238 : vector<2x1xf32> to vector<1x2x1xf32>
    %245 = arith.addf %243, %244 : vector<1x2x1xf32>
    %c0_90 = arith.constant 0 : index
    %c0_91 = arith.constant 0 : index
    %c0_92 = arith.constant 0 : index
    %246 = vector.load %arg6[%c0_90, %c0_91, %c0_92] : memref<1x2x1xf32, #tpu.memory_space<vmem>>, vector<1x2x1xf32>
    tpu.vector_store %arg6[%c0_90, %c0_91, %c0_92], %245 {strides = array<i32>} : memref<1x2x1xf32, #tpu.memory_space<vmem>>, vector<1x2x1xf32>,
    %c0_93 = arith.constant 0 : index
    %c0_94 = arith.constant 0 : index
    %c0_95 = arith.constant 0 : index
    %247 = vector.load %arg7[%c0_93, %c0_94, %c0_95] : memref<1x2x1xf32, #tpu.memory_space<vmem>>, vector<1x2x1xf32>
    %248 = vector.shape_cast %242 : vector<2x1xf32> to vector<1x2x1xf32>
    %249 = arith.addf %247, %248 : vector<1x2x1xf32>
    %c0_96 = arith.constant 0 : index
    %c0_97 = arith.constant 0 : index
    %c0_98 = arith.constant 0 : index
    %250 = vector.load %arg7[%c0_96, %c0_97, %c0_98] : memref<1x2x1xf32, #tpu.memory_space<vmem>>, vector<1x2x1xf32>
    tpu.vector_store %arg7[%c0_96, %c0_97, %c0_98], %249 {strides = array<i32>} : memref<1x2x1xf32, #tpu.memory_space<vmem>>, vector<1x2x1xf32>,
    return
  }
  func.func @transform_0(%arg0: i32, %arg1: i32) -> (i32, i32) {
    %c1_i32 = arith.constant 1 : i32
    %0 = arith.muli %arg0, %c1_i32 : i32
    %1 = arith.addi %0, %arg1 : i32
    %c0_i32 = arith.constant 0 : i32
    %c0_i32_0 = arith.constant 0 : i32
    return %1, %c0_i32 : i32, i32
  }
  func.func @transform_1(%arg0: i32, %arg1: i32) -> (i32, i32) {
    %c0_i32 = arith.constant 0 : i32
    %c0_i32_0 = arith.constant 0 : i32
    %c0_i32_1 = arith.constant 0 : i32
    return %c0_i32, %c0_i32_0 : i32, i32
  }
  func.func @transform_2(%arg0: i32, %arg1: i32) -> (i32, i32) {
    %c0_i32 = arith.constant 0 : i32
    %c0_i32_0 = arith.constant 0 : i32
    %c0_i32_1 = arith.constant 0 : i32
    return %c0_i32, %c0_i32_0 : i32, i32
  }
  func.func @transform_3(%arg0: i32, %arg1: i32) -> (i32, i32, i32) {
    %c1_i32 = arith.constant 1 : i32
    %0 = arith.muli %arg0, %c1_i32 : i32
    %1 = arith.addi %0, %arg1 : i32
    %c0_i32 = arith.constant 0 : i32
    %c0_i32_0 = arith.constant 0 : i32
    %c0_i32_1 = arith.constant 0 : i32
    return %1, %c0_i32, %c0_i32_0 : i32, i32, i32
  }
  func.func @transform_4(%arg0: i32, %arg1: i32) -> (i32, i32, i32) {
    %c0_i32 = arith.constant 0 : i32
    %c0_i32_0 = arith.constant 0 : i32
    %c0_i32_1 = arith.constant 0 : i32
    return %arg0, %c0_i32, %c0_i32_0 : i32, i32, i32
  }
  func.func @transform_5(%arg0: i32, %arg1: i32) -> (i32, i32, i32) {
    %c0_i32 = arith.constant 0 : i32
    %c0_i32_0 = arith.constant 0 : i32
    %c0_i32_1 = arith.constant 0 : i32
    return %arg0, %c0_i32, %c0_i32_0 : i32, i32, i32
  }
}

</mosaic_0001>

<bundles_post_ra>
// kernel: tpu_custom_call.1
= control target key start
LH: loop header
LB: loop body
LE: loop exit
PB: predicated region body
PF: predicated region fallthrough
CT: control target
= control target key end

     0   :  { %11 = vsyncpa [#allocation3], 0  ;;  %s1656_s0 = inlined_call_operand.hbm [shape: f32[32,256], index: 0, kind: input, shape index: {}]   ;;  %s1657_s1 = inlined_call_operand.hbm [shape: f32[2,144], index: 1, kind: input, shape index: {}]   ;;  %s1658_s2 = inlined_call_operand.vmem [shape: s32[1,256], index: 2, kind: input, shape index: {}]   ;;  %s1659_s3 = inlined_call_operand.hbm [shape: f32[2,2,256], index: 3, kind: output, shape index: {0}]   ;;  %s1660_s4 = inlined_call_operand.vmem [shape: f32[1,2,1], index: 4, kind: output, shape index: {1}]   ;;  %s1661_s5 = inlined_call_operand.vmem [shape: f32[1,2,1], index: 5, kind: output, shape index: {2}]  }
   0x1   :  { %12 = vsyncpa [#allocation6], 0 }
   0x2   :  { %13 = vsyncpa [#allocation4], 0  ;;  %s959_s18 = smov [#allocation2]  }
   0x3   :  { %s24_s19 = sshll.u32 %s959_s18, 4  ;;  %s25_s19 = int_to_ptr.vmem [resolvable:$true] %s24_s19 }
   0x4   :  { %s901_s20 = scalar_lea.vmem %s25_s19, 1024  ;;  %p906_p1 = scmp.lt.s32.totalorder %s25_s19, %s25_s19 }
   0x5   :  { %p902_p0 = scmp.ne.s32.totalorder %s25_s19, %s901_s20  ;;  %p907_p2 = scmp.lt.s32.totalorder %s901_s20, %s901_s20 }
   0x7   :  { %p908_p3 = por %p907_p2, %p906_p1 }
   0x9   :  { %p909_p4 = pnand %p908_p3, %p902_p0 }
   0xb   :  { %912 = shalt.err (!%p909_p4)
}
   0xc   :  { %s960_s21 = smov 256   ;;  %s961_s22 = smov 16  }
   0xd   :  { %30 = dma.hbm_to_vmem [thread:$0]  %s1656_s0, 1024, %s25_s19, [#allocation3], %s960_s21, %s960_s21, %s961_s22  }
   0xe   :  { %s962_s25 = smov [#allocation5]  }
   0xf   :  { %s37_s26 = sshll.u32 %s962_s25, 4  ;;  %s38_s26 = int_to_ptr.vmem [resolvable:$true] %s37_s26 }
  0x10   :  { %s921_s27 = scalar_lea.vmem %s38_s26, 64  ;;  %p926_p6 = scmp.lt.s32.totalorder %s38_s26, %s38_s26 }
  0x11   :  { %p922_p5 = scmp.ne.s32.totalorder %s38_s26, %s921_s27  ;;  %p927_p7 = scmp.lt.s32.totalorder %s921_s27, %s921_s27 }
  0x13   :  { %p928_p8 = por %p927_p7, %p926_p6 }
  0x15   :  { %p929_p9 = pnand %p928_p8, %p922_p5 }
  0x17   :  { %932 = shalt.err (!%p929_p9)
}
  0x18   :  { %40 = dma.hbm_to_vmem [thread:$0]  %s1657_s1, 64, %s38_s26, [#allocation6]  }
  0x19   :  { %953 = dma.done.wait [#allocation3], 1024  }
  0x1a   :  { %954 = vsyncadd [#allocation3], 4294966272 }
  0x1b   :  { %955 = dma.done.wait [#allocation6], 64  }
  0x1c   :  { %956 = vsyncadd [#allocation6], 4294967232  ;;  %v1012_v0 = vld [vmem:[#allocation2 + $0x18] sm:$0xff]  ;;  %v1014_v1 = vld [vmem:[#allocation2 + $0x10] sm:$0xff]  ;;  %s963_s0 = smov 112   ;;  %s964_s1 = smov 113   ;;  %v68_v8 = vlaneseq }
  0x1d   :  { %472 = vrot.lane.b32.xlu1 %v1012_v0, %s963_s0  ;;  %464 = vrot.lane.b32.xlu0 %v1014_v1, %s963_s0  ;;  %v1018_v2 = vld [vmem:[#allocation2 + $0x38] sm:$0xff]  ;;  %v1020_v3 = vld [vmem:[#allocation2 + $0x30] sm:$0xff]  ;;  %v1024_v4 = vld [vmem:[#allocation2 + $0x20] sm:$0xff]  ;;  %s965_s30 = smov 127   ;;  %s966_s6 = smov 1   ;;  %v967_v13 = vmov 0  }
  0x1e   :  { %v1026_v5 = vld [vmem:[#allocation2] sm:$0xff]  ;;  %v1030_v6 = vld [vmem:[#allocation2 + $0x28] sm:$0xff]  ;;  %v109_v10 = vshrl.u32 %v68_v8, 7  ;;  %v1073_v16 = vand.u32 127, %v68_v8  ;;  %s969_s9 = smov 17   ;;  %s970_s10 = smov 111  }
  0x1f   :  { %v1032_v7 = vld [vmem:[#allocation2 + $0x8] sm:$0xff]  ;;  %v1059_v9 = vld [vmem:[%s1658_s2] sm:$0x3]  ;;  %s968_s2 = smov 15   ;;  %v1683_v54 = vmov 0  ;;  %v1685_v55 = vmov 0 }
  0x20   :  { %vm179_vm0 = vcmp.ge.s32.totalorder %v1059_v9, 0  ;;  %vm193_vm1 = vcmp.lt.s32.totalorder %v1059_v9, 16  ;;  %v1065_v11 = vsub.s32 1, %v109_v10  ;;  %v1069_v12 = vsub.s32 0, %v109_v10  ;;  %s972_s15 = smov [#allocation7]  }
  0x21   :  { %476 = vrot.lane.b32.xlu1 %v1018_v2, %s963_s0  ;;  %468 = vrot.lane.b32.xlu0 %v1020_v3, %s963_s0  ;;  %v180_v14 = vsel %vm179_vm0, 1, %v967_v13  ;;  %v194_v15 = vsel %vm193_vm1, 1, %v967_v13  ;;  %v1081_v20 = vadd.s32 4294967280, %v1073_v16  ;;  %v70_v27 = vadd.s32 128, %v1073_v16  ;;  %s787_s16 = sshll.u32 %s972_s15, 4  ;;  %s788_s16 = int_to_ptr.vmem [resolvable:$true] %s787_s16 }
  0x22   :  { %v188_v17 = vrot.slane %v180_v14, %v1065_v11  ;;  %v202_v18 = vrot.slane %v194_v15, %v1065_v11  ;;  %v184_v19 = vrot.slane %v180_v14, %v1069_v12  ;;  %v198_v21 = vrot.slane %v194_v15, %v1069_v12  ;;  %v1167_v35 = vld.sshfl [vmem:[#allocation5] sm:$0x33 pattern:$0x76325410]  ;;  %s933_s17 = scalar_lea.vmem %s788_s16, 128  ;;  %p938_p11 = scmp.lt.s32.totalorder %s788_s16, %s788_s16 }
  0x23   :  { %vm1662_vm5 = vcmp.ge.s32.totalorder %v1081_v20, 0  ;;  %v1140_v28 = vadd.s32 16, %v70_v27  ;;  %v105_v29 = vadd.s32 4294967295, %v1059_v9  ;;  %vm1663_vm0 = vcmp.lt.s32.totalorder %v1073_v16, 112  ;;  %p934_p10 = scmp.ne.s32.totalorder %s788_s16, %s933_s17  ;;  %p939_p12 = scmp.lt.s32.totalorder %s933_s17, %s933_s17 }
  0x24   :  { %vm1084_vm2 = vcmp.ne.s32.totalorder %v188_v17, 0  ;;  %vm1088_vm3 = vcmp.ne.s32.totalorder %v202_v18, 0  ;;  %vm1094_vm4 = vcmp.ne.s32.totalorder %v184_v19, 0  ;;  %vm1103_vm7 = vcmp.ne.s32.totalorder %v198_v21, 0 }
  0x25   :  { %466 = vrot.lane.b32.xlu1 %v1024_v4, %s963_s0  ;;  %462 = vrot.lane.b32.xlu0 %v1026_v5, %s963_s0  ;;  %vm1111_vm8 = vmand %vm1662_vm5, %vm1094_vm4  ;;  %vm1664_vm10 = vcmp.lt.s32.totalorder %v1140_v28, 256  ;;  %vm106_vm14 = vcmp.ge.s32.totalorder %v105_v29, 0  ;;  %vm120_vm15 = vcmp.lt.s32.totalorder %v105_v29, 16  ;;  %v569_v37 = vcombine.high %v1167_v35, %v1167_v35  ;;  %p940_p13 = por %p939_p12, %p938_p11 }
  0x26   :  { %vm488_vm11 = vmand %vm1664_vm10, %vm1084_vm2  ;;  %v107_v34 = vsel %vm106_vm14, 1, %v967_v13  ;;  %v121_v36 = vsel %vm120_vm15, 1, %v967_v13  ;;  %v252_v49 = vadd.s32 1, %v1059_v9 }
  0x27   :  { %vm490_vm12 = vmand %vm488_vm11, %vm1088_vm3  ;;  %v115_v39 = vrot.slane %v107_v34, %v1065_v11  ;;  %v111_v45 = vrot.slane %v107_v34, %v1069_v12  ;;  %v125_v46 = vrot.slane %v121_v36, %v1069_v12  ;;  %v129_v47 = vrot.slane %v121_v36, %v1065_v11  ;;  %p941_p0 = pnand %p940_p13, %p934_p10 }
  0x28   :  { %vm489_vm13 = vmand %vm1094_vm4, %vm1103_vm7  ;;  %v492_v30 = vsel %vm490_vm12, 1, %v967_v13  ;;  %vm571_vm4 = vcmask 130048   ;;  %vm253_vm6 = vcmp.ge.s32.totalorder %v252_v49, 0  ;;  %vm267_vm5 = vcmp.lt.s32.totalorder %v252_v49, 16 }
  0x29   :  { %474 = vrot.lane.b32.xlu1 %v1030_v6, %s963_s0  ;;  %470 = vrot.lane.b32.xlu0 %v1032_v7, %s963_s0  ;;  %v491_v31 = vsel %vm489_vm13, 1, %v967_v13  ;;  %v500_v32 = vrot.slane %v492_v30, %v1069_v12  ;;  %vm1201_vm12 = vcmp.ne.s32.totalorder %v115_v39, 0  ;;  %vm1210_vm13 = vcmp.ne.s32.totalorder %v111_v45, 0 }
  0x2a   :  { %v496_v33 = vrot.slane %v491_v31, %v1069_v12  ;;  %841 = vmatprep.mubr.msk.f32.mxu0 %vm571_vm4, %v569_v37  ;;  %875 = vmatprep.mubr.msk.f32.mxu1 %vm571_vm4, %v569_v37  ;;  %v1684_v54 = vsel %vm1210_vm13, 4294967295, %v1683_v54  ;;  %vm1214_vm14 = vcmp.ne.s32.totalorder %v125_v46, 0  ;;  %vm1222_vm15 = vcmp.ne.s32.totalorder %v129_v47, 0  ;;  %vm439_vm4 = vmand %vm1664_vm10, %vm1201_vm12 }
  0x2b   :  { %vm1177_vm1 = vcmp.eq.s32.totalorder %v500_v32, 1  ;;  %v1686_v55 = vsel %vm1214_vm14, 4294967295, %v1685_v55  ;;  %vm334_vm9 = vmand %vm1210_vm13, %vm1214_vm14  ;;  %v254_v63 = vsel %vm253_vm6, 1, %v967_v13  ;;  %v268_v8 = vsel %vm267_vm5, 1, %v967_v13 }
  0x2c   :  { %vm1182_vm11 = vcmp.eq.s32.totalorder %v496_v33, 1  ;;  %v336_v61 = vsel %vm334_vm9, 1, %v967_v13  ;;  %vm1689_vm10 = vcmp.lt.s32.totalorder %v1073_v16, 112  ;;  %v262_v24 = vrot.slane %v254_v63, %v1065_v11 }
  0x2d   :  { %411 = vrot.lane.b32.xlu1 %v1020_v3, %s964_s1  ;;  %407 = vrot.lane.b32.xlu0 %v1014_v1, %s964_s1  ;;  %v341_v21 = vrot.slane %v336_v61, %v1069_v12  ;;  %v276_v27 = vrot.slane %v268_v8, %v1065_v11  ;;  %vm421_vm5 = vcmp.lt.s32.totalorder %v1073_v16, 113  ;;  %v258_v29 = vrot.slane %v254_v63, %v1069_v12 }
  0x2e   :  { %v272_v30 = vrot.slane %v268_v8, %v1069_v12 }
  0x2f   :  { %vm1275_vm9 = vcmp.eq.s32.totalorder %v341_v21, 1 }
  0x31   :  { %419 = vrot.lane.b32.xlu1 %v1018_v2, %s964_s1  ;;  %415 = vrot.lane.b32.xlu0 %v1012_v0, %s964_s1 }
  0x35   :  { %409 = vrot.lane.b32.xlu1 %v1024_v4, %s964_s1  ;;  %405 = vrot.lane.b32.xlu0 %v1026_v5, %s964_s1 }
  0x39   :  { %417 = vrot.lane.b32.xlu1 %v1030_v6, %s964_s1  ;;  %413 = vrot.lane.b32.xlu0 %v1032_v7, %s964_s1 }
  0x3d   :  { %362 = vrot.lane.b32.xlu1 %v1020_v3, %s965_s30  ;;  %358 = vrot.lane.b32.xlu0 %v1014_v1, %s965_s30 }
  0x41   :  { %370 = vrot.lane.b32.xlu1 %v1018_v2, %s965_s30  ;;  %366 = vrot.lane.b32.xlu0 %v1012_v0, %s965_s30 }
  0x45   :  { %360 = vrot.lane.b32.xlu1 %v1024_v4, %s965_s30  ;;  %356 = vrot.lane.b32.xlu0 %v1026_v5, %s965_s30 }
  0x49   :  { %368 = vrot.lane.b32.xlu1 %v1030_v6, %s965_s30  ;;  %364 = vrot.lane.b32.xlu0 %v1032_v7, %s965_s30 }
  0x4d   :  { %307 = vrot.lane.b32.xlu1 %v1020_v3, %s966_s6  ;;  %303 = vrot.lane.b32.xlu0 %v1014_v1, %s966_s6 }
  0x51   :  { %315 = vrot.lane.b32.xlu1 %v1018_v2, %s966_s6  ;;  %311 = vrot.lane.b32.xlu0 %v1012_v0, %s966_s6 }
  0x55   :  { %305 = vrot.lane.b32.xlu1 %v1024_v4, %s966_s6  ;;  %301 = vrot.lane.b32.xlu0 %v1026_v5, %s966_s6 }
  0x59   :  { %313 = vrot.lane.b32.xlu1 %v1030_v6, %s966_s6  ;;  %309 = vrot.lane.b32.xlu0 %v1032_v7, %s966_s6 }
  0x5d   :  { %233 = vrot.lane.b32.xlu1 %v1020_v3, %s968_s2  ;;  %229 = vrot.lane.b32.xlu0 %v1014_v1, %s968_s2 }
  0x61   :  { %241 = vrot.lane.b32.xlu1 %v1018_v2, %s968_s2  ;;  %237 = vrot.lane.b32.xlu0 %v1012_v0, %s968_s2 }
  0x65   :  { %231 = vrot.lane.b32.xlu1 %v1024_v4, %s968_s2  ;;  %227 = vrot.lane.b32.xlu0 %v1026_v5, %s968_s2 }
  0x69   :  { %239 = vrot.lane.b32.xlu1 %v1030_v6, %s968_s2  ;;  %235 = vrot.lane.b32.xlu0 %v1032_v7, %s968_s2 }
  0x6d   :  { %160 = vrot.lane.b32.xlu1 %v1020_v3, %s961_s22  ;;  %156 = vrot.lane.b32.xlu0 %v1014_v1, %s961_s22 }
  0x71   :  { %168 = vrot.lane.b32.xlu1 %v1018_v2, %s961_s22  ;;  %164 = vrot.lane.b32.xlu0 %v1012_v0, %s961_s22 }
  0x75   :  { %158 = vrot.lane.b32.xlu1 %v1024_v4, %s961_s22  ;;  %154 = vrot.lane.b32.xlu0 %v1026_v5, %s961_s22 }
  0x79   :  { %166 = vrot.lane.b32.xlu1 %v1030_v6, %s961_s22  ;;  %162 = vrot.lane.b32.xlu0 %v1032_v7, %s961_s22 }
  0x7d   :  { %78 = vrot.lane.b32.xlu1 %v1020_v3, %s969_s9  ;;  %74 = vrot.lane.b32.xlu0 %v1014_v1, %s969_s9 }
  0x81   :  { %86 = vrot.lane.b32.xlu1 %v1018_v2, %s969_s9  ;;  %82 = vrot.lane.b32.xlu0 %v1012_v0, %s969_s9 }
  0x85   :  { %76 = vrot.lane.b32.xlu1 %v1024_v4, %s969_s9  ;;  %72 = vrot.lane.b32.xlu0 %v1026_v5, %s969_s9 }
  0x89   :  { %84 = vrot.lane.b32.xlu1 %v1030_v6, %s969_s9  ;;  %80 = vrot.lane.b32.xlu0 %v1032_v7, %s969_s9 }
  0x8d   :  { %517 = vrot.lane.b32.xlu1 %v1020_v3, %s970_s10  ;;  %513 = vrot.lane.b32.xlu0 %v1014_v1, %s970_s10 }
  0x8f   :  { %v473_v40 = vpop.permute.xlu1 %472  ;;  %v465_v41 = vpop.permute.xlu0 %464 }
  0x90   :  { %v484_v43 = vsel %vm1663_vm0, %v473_v40, %v465_v41  ;;  %v480_v44 = vsel %vm1663_vm0, %v465_v41, %v473_v40 }
  0x91   :  { %525 = vrot.lane.b32.xlu1 %v1018_v2, %s970_s10  ;;  %809 = vmatprep.subr.msk.mxu0 %vm1177_vm1, %v484_v43 }
  0x92   :  { %521 = vrot.lane.b32.xlu0 %v1012_v0, %s970_s10  ;;  %810 = vmatpush1.msk.msra.mxu0 %vm1182_vm11, %v480_v44 }
  0x93   :  { %v477_v50 = vpop.permute.xlu1 %476  ;;  %v469_v51 = vpop.permute.xlu0 %468 }
  0x94   :  { %v486_v52 = vsel %vm1663_vm0, %v477_v50, %v469_v51  ;;  %v482_v53 = vsel %vm1663_vm0, %v469_v51, %v477_v50  ;;  %vm441_vm0 = vmand %vm439_vm4, %vm1222_vm15 }
  0x95   :  { %515 = vrot.lane.b32.xlu1 %v1024_v4, %s970_s10  ;;  %843 = vmatprep.subr.msk.mxu1 %vm1177_vm1, %v486_v52  ;;  %v443_v62 = vsel %vm441_vm0, 1, %v967_v13  ;;  %vm1690_vm4 = vmmov %vm1689_vm10  ;;  %vm1283_vm0 = vcmp.ne.s32.totalorder %v276_v27, 0 }
  0x96   :  { %511 = vrot.lane.b32.xlu0 %v1026_v5, %s970_s10  ;;  %844 = vmatpush1.msk.msra.mxu1 %vm1182_vm11, %v482_v53  ;;  %vm1691_vm14 = vmmov %vm1690_vm4  ;;  %v451_v17 = vrot.slane %v443_v62, %v1069_v12 }
  0x97   :  { %v467_v57 = vpop.permute.xlu1 %466  ;;  %v463_v58 = vpop.permute.xlu0 %462  ;;  %vm1692_vm13 = vmmov %vm1690_vm4 }
  0x98   :  { %vm1271_vm6 = vcmp.eq.s32.totalorder %v451_v17, 1 }
  0x99   :  { %523 = vrot.lane.b32.xlu1 %v1030_v6, %s970_s10 }
  0x9a   :  { %519 = vrot.lane.b32.xlu0 %v1032_v7, %s970_s10 }
  0x9b   :  { %v475_v59 = vpop.permute.xlu1 %474  ;;  %v471_v60 = vpop.permute.xlu0 %470 }
  0x9c   :  { %v481_v9 = vsel %vm1689_vm10, %v467_v57, %v475_v59  ;;  %v485_v10 = vsel %vm1690_vm4, %v475_v59, %v467_v57  ;;  %v479_v14 = vsel %vm1691_vm14, %v463_v58, %v471_v60  ;;  %v483_v15 = vsel %vm1692_vm13, %v471_v60, %v463_v58 }
  0x9d   :  { %811 = vmatprep.subr.msk.mxu0 %vm1177_vm1, %v483_v15  ;;  %845 = vmatprep.subr.msk.mxu1 %vm1177_vm1, %v485_v10  ;;  %vm1279_vm10 = vcmp.ne.s32.totalorder %v262_v24, 0  ;;  %vm1299_vm1 = vcmp.ne.s32.totalorder %v258_v29, 0  ;;  %vm372_vm4 = vcmp.lt.s32.totalorder %v1073_v16, 127 }
  0x9e   :  { %812 = vmatpush1.msk.msra.mxu0 %vm1182_vm11, %v479_v14  ;;  %846 = vmatpush1.msk.msra.mxu1 %vm1182_vm11, %v481_v9  ;;  %vm1303_vm11 = vcmp.ne.s32.totalorder %v272_v30, 0  ;;  %vm280_vm13 = vmand %vm1279_vm10, %vm1283_vm0 }
  0x9f   :  { %v412_v18 = vpop.permute.xlu1 %411  ;;  %v408_v19 = vpop.permute.xlu0 %407  ;;  %vm383_vm14 = vmand %vm1299_vm1, %vm1303_vm11  ;;  %v282_v47 = vsel %vm280_vm13, 1, %v967_v13 }
  0xa0   :  { %v385_v49 = vsel %vm383_vm14, 1, %v967_v13  ;;  %v290_v57 = vrot.slane %v282_v47, %v1069_v12  ;;  %vm133_vm13 = vmand %vm1201_vm12, %vm1222_vm15  ;;  %vm317_vm12 = vcmp.lt.s32.totalorder %v1073_v16, 1  ;;  %vm1711_vm14 = vcmp.ge.s32.totalorder %v1081_v20, 0 }
  0xa1   :  { %v390_v60 = vrot.slane %v385_v49, %v1069_v12 }
  0xa3   :  { %v420_v32 = vpop.permute.xlu1 %419  ;;  %v416_v33 = vpop.permute.xlu0 %415 }
  0xa4   :  { %v425_v37 = vsel %vm421_vm5, %v412_v18, %v420_v32  ;;  %v429_v38 = vsel %vm421_vm5, %v420_v32, %v412_v18  ;;  %v423_v39 = vsel %vm421_vm5, %v408_v19, %v416_v33  ;;  %v427_v40 = vsel %vm421_vm5, %v416_v33, %v408_v19 }
  0xa5   :  { %813 = vmatprep.subr.msk.mxu0 %vm1271_vm6, %v427_v40  ;;  %847 = vmatprep.subr.msk.mxu1 %vm1271_vm6, %v429_v38  ;;  %v135_v19 = vsel %vm133_vm13, 1, %v967_v13 }
  0xa6   :  { %814 = vmatpush1.msk.msra.mxu0 %vm1275_vm9, %v423_v39  ;;  %848 = vmatpush1.msk.msra.mxu1 %vm1275_vm9, %v425_v37  ;;  %v143_v48 = vrot.slane %v135_v19, %v1069_v12 }
  0xa7   :  { %v410_v43 = vpop.permute.xlu1 %409  ;;  %v406_v44 = vpop.permute.xlu0 %405 }
  0xa8   :  { %vm1393_vm15 = vcmp.eq.s32.totalorder %v143_v48, 1 }
  0xab   :  { %v418_v45 = vpop.permute.xlu1 %417  ;;  %v414_v46 = vpop.permute.xlu0 %413 }
  0xac   :  { %v424_v50 = vsel %vm421_vm5, %v410_v43, %v418_v45  ;;  %v428_v51 = vsel %vm421_vm5, %v418_v45, %v410_v43  ;;  %v422_v52 = vsel %vm421_vm5, %v406_v44, %v414_v46  ;;  %v426_v53 = vsel %vm421_vm5, %v414_v46, %v406_v44 }
  0xad   :  { %815 = vmatprep.subr.msk.mxu0 %vm1271_vm6, %v426_v53  ;;  %849 = vmatprep.subr.msk.mxu1 %vm1271_vm6, %v428_v51  ;;  %vm1340_vm5 = vcmp.eq.s32.totalorder %v290_v57, 1  ;;  %vm1344_vm6 = vcmp.eq.s32.totalorder %v390_v60, 1 }
  0xae   :  { %816 = vmatpush1.msk.msra.mxu0 %vm1275_vm9, %v422_v52  ;;  %850 = vmatpush1.msk.msra.mxu1 %vm1275_vm9, %v424_v50 }
  0xaf   :  { %v363_v58 = vpop.permute.xlu1 %362  ;;  %v359_v59 = vpop.permute.xlu0 %358 }
  0xb3   :  { %v371_v62 = vpop.permute.xlu1 %370  ;;  %v367_v63 = vpop.permute.xlu0 %366 }
  0xb4   :  { %v376_v9 = vsel %vm372_vm4, %v363_v58, %v371_v62  ;;  %v380_v10 = vsel %vm372_vm4, %v371_v62, %v363_v58  ;;  %v374_v14 = vsel %vm372_vm4, %v359_v59, %v367_v63  ;;  %v378_v15 = vsel %vm372_vm4, %v367_v63, %v359_v59 }
  0xb5   :  { %817 = vmatprep.subr.msk.mxu0 %vm1340_vm5, %v378_v15  ;;  %851 = vmatprep.subr.msk.mxu1 %vm1340_vm5, %v380_v10 }
  0xb6   :  { %818 = vmatpush1.msk.msra.mxu0 %vm1344_vm6, %v374_v14  ;;  %852 = vmatpush1.msk.msra.mxu1 %vm1344_vm6, %v376_v9 }
  0xb7   :  { %v361_v17 = vpop.permute.xlu1 %360  ;;  %v357_v18 = vpop.permute.xlu0 %356 }
  0xbb   :  { %v369_v21 = vpop.permute.xlu1 %368  ;;  %v365_v24 = vpop.permute.xlu0 %364 }
  0xbc   :  { %v375_v27 = vsel %vm372_vm4, %v361_v17, %v369_v21  ;;  %v379_v29 = vsel %vm372_vm4, %v369_v21, %v361_v17  ;;  %v373_v30 = vsel %vm372_vm4, %v357_v18, %v365_v24  ;;  %v377_v31 = vsel %vm372_vm4, %v365_v24, %v357_v18  ;;  %vm265_vm4 = vmand %vm1711_vm14, %vm1299_vm1 }
  0xbd   :  { %819 = vmatprep.subr.msk.mxu0 %vm1340_vm5, %v377_v31  ;;  %853 = vmatprep.subr.msk.mxu1 %vm1340_vm5, %v379_v29  ;;  %vm279_vm13 = vmand %vm265_vm4, %vm1303_vm11  ;;  %vm243_vm1 = vcmp.lt.s32.totalorder %v1073_v16, 15  ;;  %vm1722_vm4 = vnez %v1686_v55 }
  0xbe   :  { %820 = vmatpush1.msk.msra.mxu0 %vm1344_vm6, %v373_v30  ;;  %854 = vmatpush1.msk.msra.mxu1 %vm1344_vm6, %v375_v27  ;;  %v281_v39 = vsel %vm279_vm13, 1, %v967_v13 }
  0xbf   :  { %v308_v56 = vpop.permute.xlu1 %307  ;;  %v304_v32 = vpop.permute.xlu0 %303  ;;  %586 = vmatprep.subr.mxu0 %v1012_v0  ;;  %684 = vmatprep.subr.mxu1 %v1018_v2  ;;  %v286_v46 = vrot.slane %v281_v39, %v1069_v12 }
  0xc0   :  { %587 = vmatpush1.msra.mxu0 %v1014_v1  ;;  %685 = vmatpush1.msra.mxu1 %v1020_v3 }
  0xc1   :  { %588 = vmatprep.subr.mxu0 %v1032_v7  ;;  %686 = vmatprep.subr.mxu1 %v1030_v6  ;;  %vm1440_vm11 = vcmp.eq.s32.totalorder %v286_v46, 1 }
  0xc2   :  { %589 = vmatpush1.msra.mxu0 %v1026_v5  ;;  %687 = vmatpush1.msra.mxu1 %v1024_v4 }
  0xc3   :  { %v316_v0 = vpop.permute.xlu1 %315  ;;  %v312_v2 = vpop.permute.xlu0 %311 }
  0xc4   :  { %v321_v1 = vsel %vm317_vm12, %v308_v56, %v316_v0  ;;  %v325_v3 = vsel %vm317_vm12, %v316_v0, %v308_v56  ;;  %v319_v7 = vsel %vm317_vm12, %v304_v32, %v312_v2  ;;  %v323_v6 = vsel %vm317_vm12, %v312_v2, %v304_v32 }
  0xc5   :  { %821 = vmatprep.subr.msk.mxu0 %vm1393_vm15, %v319_v7  ;;  %855 = vmatprep.subr.msk.mxu1 %vm1393_vm15, %v321_v1 }
  0xc6   :  { %822 = vmatpush1.msk.msra.mxu0 %vm1275_vm9, %v323_v6  ;;  %856 = vmatpush1.msk.msra.mxu1 %vm1275_vm9, %v325_v3 }
  0xc7   :  { %v306_v4 = vpop.permute.xlu1 %305  ;;  %v302_v5 = vpop.permute.xlu0 %301 }
  0xcb   :  { %v314_v37 = vpop.permute.xlu1 %313  ;;  %v310_v38 = vpop.permute.xlu0 %309 }
  0xcc   :  { %v320_v40 = vsel %vm317_vm12, %v306_v4, %v314_v37  ;;  %v324_v41 = vsel %vm317_vm12, %v314_v37, %v306_v4  ;;  %v318_v43 = vsel %vm317_vm12, %v302_v5, %v310_v38  ;;  %v322_v44 = vsel %vm317_vm12, %v310_v38, %v302_v5  ;;  %vm1715_vm12 = vmand %vm1111_vm8, %vm1103_vm7 }
  0xcd   :  { %823 = vmatprep.subr.msk.mxu0 %vm1393_vm15, %v318_v43  ;;  %857 = vmatprep.subr.msk.mxu1 %vm1393_vm15, %v320_v40  ;;  %v207_v63 = vsel %vm1715_vm12, 1, %v967_v13  ;;  %vm1720_vm8 = vnez %v1684_v54 }
  0xce   :  { %824 = vmatpush1.msk.msra.mxu0 %vm1275_vm9, %v322_v44  ;;  %858 = vmatpush1.msk.msra.mxu1 %vm1275_vm9, %v324_v41  ;;  %vm1714_vm9 = vmand %vm1084_vm2, %vm1088_vm3  ;;  %v212_v15 = vrot.slane %v207_v63, %v1069_v12  ;;  %vm170_vm2 = vcmp.lt.s32.totalorder %v1073_v16, 16 }
  0xcf   :  { %v234_v42 = vpop.permute.xlu1 %233  ;;  %v230_v45 = vpop.permute.xlu0 %229  ;;  %v208_v62 = vsel %vm1714_vm9, 1, %v967_v13  ;;  %vm1725_vm9 = vcmp.lt.s32.totalorder %v1140_v28, 256 }
  0xd0   :  { %v216_v25 = vrot.slane %v208_v62, %v1069_v12  ;;  %vm1495_vm7 = vcmp.eq.s32.totalorder %v212_v15, 1  ;;  %vm537_vm12 = vmand %vm1725_vm9, %vm1279_vm10  ;;  %vm527_vm10 = vcmp.lt.s32.totalorder %v1073_v16, 111 }
  0xd2   :  { %vm1491_vm3 = vcmp.eq.s32.totalorder %v216_v25, 1 }
  0xd3   :  { %v242_v47 = vpop.permute.xlu1 %241  ;;  %v238_v49 = vpop.permute.xlu0 %237 }
  0xd4   :  { %v247_v51 = vsel %vm243_vm1, %v234_v42, %v242_v47  ;;  %v251_v52 = vsel %vm243_vm1, %v242_v47, %v234_v42  ;;  %v245_v34 = vsel %vm243_vm1, %v230_v45, %v238_v49  ;;  %v249_v53 = vsel %vm243_vm1, %v238_v49, %v230_v45 }
  0xd5   :  { %825 = vmatprep.subr.msk.mxu0 %vm1340_vm5, %v245_v34  ;;  %859 = vmatprep.subr.msk.mxu1 %vm1340_vm5, %v247_v51 }
  0xd6   :  { %826 = vmatpush1.msk.msra.mxu0 %vm1440_vm11, %v249_v53  ;;  %860 = vmatpush1.msk.msra.mxu1 %vm1440_vm11, %v251_v52 }
  0xd7   :  { %v232_v57 = vpop.permute.xlu1 %231  ;;  %v228_v58 = vpop.permute.xlu0 %227 }
  0xdb   :  { %v240_v59 = vpop.permute.xlu1 %239  ;;  %v236_v60 = vpop.permute.xlu0 %235 }
  0xdc   :  { %v246_v9 = vsel %vm243_vm1, %v232_v57, %v240_v59  ;;  %v250_v10 = vsel %vm243_vm1, %v240_v59, %v232_v57  ;;  %v244_v22 = vsel %vm243_vm1, %v228_v58, %v236_v60  ;;  %v248_v23 = vsel %vm243_vm1, %v236_v60, %v228_v58 }
  0xdd   :  { %827 = vmatprep.subr.msk.mxu0 %vm1340_vm5, %v244_v22  ;;  %861 = vmatprep.subr.msk.mxu1 %vm1340_vm5, %v246_v9  ;;  %vm1721_vm5 = vmmov %vm1711_vm14  ;;  %vm88_vm1 = vcmp.lt.s32.totalorder %v1073_v16, 17 }
  0xde   :  { %828 = vmatpush1.msk.msra.mxu0 %vm1440_vm11, %v248_v23  ;;  %862 = vmatpush1.msk.msra.mxu1 %vm1440_vm11, %v250_v10  ;;  %vm118_vm14 = vmand %vm1721_vm5, %vm1720_vm8 }
  0xdf   :  { %v161_v26 = vpop.permute.xlu1 %160  ;;  %v157_v14 = vpop.permute.xlu0 %156  ;;  %vm132_vm13 = vmand %vm118_vm14, %vm1722_vm4 }
  0xe0   :  { %v134_v32 = vsel %vm132_vm13, 1, %v967_v13 }
  0xe1   :  { %v139_v3 = vrot.slane %v134_v32, %v1069_v12  ;;  %v971_v32 = vmov 0.0  }
  0xe3   :  { %v169_v61 = vpop.permute.xlu1 %168  ;;  %v165_v18 = vpop.permute.xlu0 %164  ;;  %vm1540_vm11 = vcmp.eq.s32.totalorder %v139_v3, 1 }
  0xe4   :  { %v174_v21 = vsel %vm170_vm2, %v161_v26, %v169_v61  ;;  %v178_v24 = vsel %vm170_vm2, %v169_v61, %v161_v26  ;;  %v172_v27 = vsel %vm170_vm2, %v157_v14, %v165_v18  ;;  %v176_v29 = vsel %vm170_vm2, %v165_v18, %v157_v14 }
  0xe5   :  { %829 = vmatprep.subr.msk.mxu0 %vm1491_vm3, %v172_v27  ;;  %863 = vmatprep.subr.msk.mxu1 %vm1491_vm3, %v174_v21 }
  0xe6   :  { %830 = vmatpush1.msk.msra.mxu0 %vm1495_vm7, %v176_v29  ;;  %864 = vmatpush1.msk.msra.mxu1 %vm1495_vm7, %v178_v24 }
  0xe7   :  { %v159_v30 = vpop.permute.xlu1 %158  ;;  %v155_v31 = vpop.permute.xlu0 %154 }
  0xeb   :  { %v167_v48 = vpop.permute.xlu1 %166  ;;  %v163_v56 = vpop.permute.xlu0 %162 }
  0xec   :  { %v173_v54 = vsel %vm170_vm2, %v159_v30, %v167_v48  ;;  %v177_v20 = vsel %vm170_vm2, %v167_v48, %v159_v30  ;;  %v171_v0 = vsel %vm170_vm2, %v155_v31, %v163_v56  ;;  %v175_v2 = vsel %vm170_vm2, %v163_v56, %v155_v31  ;;  %vm539_vm2 = vmand %vm537_vm12, %vm1283_vm0 }
  0xed   :  { %831 = vmatprep.subr.msk.mxu0 %vm1491_vm3, %v171_v0  ;;  %865 = vmatprep.subr.msk.mxu1 %vm1491_vm3, %v173_v54  ;;  %v541_v42 = vsel %vm539_vm2, 1, %v967_v13 }
  0xee   :  { %832 = vmatpush1.msk.msra.mxu0 %vm1495_vm7, %v175_v2  ;;  %866 = vmatpush1.msk.msra.mxu1 %vm1495_vm7, %v177_v20  ;;  %v549_v13 = vrot.slane %v541_v42, %v1069_v12 }
  0xef   :  { %v79_v55 = vpop.permute.xlu1 %78  ;;  %v75_v1 = vpop.permute.xlu0 %74 }
  0xf0   :  { %vm1585_vm0 = vcmp.eq.s32.totalorder %v549_v13, 1 }
  0xf3   :  { %v87_v7 = vpop.permute.xlu1 %86  ;;  %v83_v6 = vpop.permute.xlu0 %82 }
  0xf4   :  { %v92_v5 = vsel %vm88_vm1, %v79_v55, %v87_v7  ;;  %v96_v37 = vsel %vm88_vm1, %v87_v7, %v79_v55  ;;  %v90_v38 = vsel %vm88_vm1, %v75_v1, %v83_v6  ;;  %v94_v39 = vsel %vm88_vm1, %v83_v6, %v75_v1 }
  0xf5   :  { %833 = vmatprep.subr.msk.mxu0 %vm1393_vm15, %v90_v38  ;;  %867 = vmatprep.subr.msk.mxu1 %vm1393_vm15, %v92_v5 }
  0xf6   :  { %834 = vmatpush1.msk.msra.mxu0 %vm1540_vm11, %v94_v39  ;;  %868 = vmatpush1.msk.msra.mxu1 %vm1540_vm11, %v96_v37 }
  0xf7   :  { %v77_v40 = vpop.permute.xlu1 %76  ;;  %v73_v41 = vpop.permute.xlu0 %72 }
  0xfb   :  { %v85_v43 = vpop.permute.xlu1 %84  ;;  %v81_v44 = vpop.permute.xlu0 %80 }
  0xfc   :  { %v91_v36 = vsel %vm88_vm1, %v77_v40, %v85_v43  ;;  %v95_v28 = vsel %vm88_vm1, %v85_v43, %v77_v40  ;;  %v89_v45 = vsel %vm88_vm1, %v73_v41, %v81_v44  ;;  %v93_v46 = vsel %vm88_vm1, %v81_v44, %v73_v41 }
  0xfd   :  { %835 = vmatprep.subr.msk.mxu0 %vm1393_vm15, %v89_v45  ;;  %869 = vmatprep.subr.msk.mxu1 %vm1393_vm15, %v91_v36  ;;  %vm657_vm15 = vcmask 1041408  }
  0xfe   :  { %836 = vmatpush1.msk.msra.mxu0 %vm1540_vm11, %v93_v46  ;;  %870 = vmatpush1.msk.msra.mxu1 %vm1540_vm11, %v95_v28 }
  0xff   :  { %v518_v11 = vpop.permute.xlu1 %517  ;;  %v514_v47 = vpop.permute.xlu0 %513 }
 0x103   :  { %v526_v50 = vpop.permute.xlu1 %525 }
 0x104   :  { %v531_v33 = vsel %vm527_vm10, %v518_v11, %v526_v50  ;;  %v535_v51 = vsel %vm527_vm10, %v526_v50, %v518_v11  ;;  %v522_v52 = vpop.permute.xlu0 %521 }
 0x105   :  { %v529_v34 = vsel %vm527_vm10, %v514_v47, %v522_v52  ;;  %v533_v12 = vsel %vm527_vm10, %v522_v52, %v514_v47  ;;  %871 = vmatprep.subr.msk.mxu1 %vm1585_vm0, %v535_v51 }
 0x106   :  { %837 = vmatprep.subr.msk.mxu0 %vm1585_vm0, %v533_v12  ;;  %872 = vmatpush2.msk.msra.mxu1 %vm1344_vm6, %v531_v33 }
 0x107   :  { %838 = vmatpush2.msk.msra.mxu0 %vm1344_vm6, %v529_v34  ;;  %v516_v53 = vpop.permute.xlu1 %515 }
 0x108   :  { %v512_v57 = vpop.permute.xlu0 %511 }
 0x10b   :  { %v524_v58 = vpop.permute.xlu1 %523 }
 0x10c   :  { %v530_v59 = vsel %vm527_vm10, %v516_v53, %v524_v58  ;;  %v534_v60 = vsel %vm527_vm10, %v524_v58, %v516_v53  ;;  %v520_v62 = vpop.permute.xlu0 %519 }
 0x10d   :  { %v528_v63 = vsel %vm527_vm10, %v512_v57, %v520_v62  ;;  %v532_v9 = vsel %vm527_vm10, %v520_v62, %v512_v57  ;;  %873 = vmatprep.subr.msk.mxu1 %vm1585_vm0, %v534_v60 }
 0x10e   :  { %839 = vmatprep.subr.msk.mxu0 %vm1585_vm0, %v532_v9  ;;  %874 = vmatpush2.msk.msra.mxu1 %vm1344_vm6, %v530_v59 }
 0x10f   :  { %840 = vmatpush2.msk.msra.mxu0 %vm1344_vm6, %v528_v63  ;;  %737 = vmatmul.mubr.f32.vlgmr.msra.gmra.mxu1 %v1167_v35  ;;  %vm57_vm6 = vcmask 1024  }
 0x110   :  { %639 = vmatmul.mubr.f32.vlgmr.msra.gmra.mxu0 %v1167_v35  ;;  %58 = vst.msk [vmem:[%s1660_s4] sm:$0x3] %vm57_vm6, %v971_v32  ;;  %59 = vst.msk [vmem:[%s1661_s5] sm:$0x3] %vm57_vm6, %v971_v32 }
 0x1cf   :  { %v738_v10 = vpop.f32.mrf.mxu1 }
 0x1d0   :  { %v640_v22 = vpop.f32.mrf.mxu0  ;;  %v762_v18 = vmul.f32 %v738_v10, %v738_v10  ;;  %v756_v19 = vsel %vm657_vm15, %v738_v10, 0.0 }
 0x1d1   :  { %v664_v16 = vmul.f32 %v640_v22, %v640_v22  ;;  %v740_v23 = vpop.f32.mrf.mxu1  ;;  %v658_v61 = vsel %vm657_vm15, %v640_v22, 0.0 }
 0x1d2   :  { %v642_v25 = vpop.f32.mrf.mxu0  ;;  %v745_v26 = vcombine.low %v738_v10, %v740_v23  ;;  %v757_v35 = vsel %vm657_vm15, %v740_v23, 0.0  ;;  %v763_v21 = vmul.f32 %v740_v23, %v740_v23  ;;  %v764_v31 = vsel %vm657_vm15, %v762_v18, 0.0 }
 0x1d3   :  { %v647_v14 = vcombine.low %v640_v22, %v642_v25  ;;  %v659_v15 = vsel %vm657_vm15, %v642_v25, 0.0  ;;  %v665_v17 = vmul.f32 %v642_v25, %v642_v25  ;;  %v666_v24 = vsel %vm657_vm15, %v664_v16, 0.0 }
 0x1d4   :  { %876 = vst.sshfl [vmem:[#allocation7 + $0x4] sm:$0x33 pattern:$0x76325410] %v745_v26  ;;  %v660_v8 = vadd.f32 %v659_v15, %v658_v61  ;;  %v758_v30 = vadd.f32 %v757_v35, %v756_v19  ;;  %v765_v48 = vsel %vm657_vm15, %v763_v21, 0.0 }
 0x1d5   :  { %842 = vst.sshfl [vmem:[#allocation7] sm:$0x33 pattern:$0x76325410] %v647_v14  ;;  %v667_v27 = vsel %vm657_vm15, %v665_v17, 0.0  ;;  %v766_v56 = vadd.f32 %v765_v48, %v764_v31 }
 0x1d6   :  { %661 = vadd.xlane.f32.xlu0 %v660_v8  ;;  %v668_v29 = vadd.f32 %v667_v27, %v666_v24 }
 0x1d8   :  { %669 = vadd.xlane.f32.xlu1 %v668_v29 }
 0x1da   :  { %759 = vadd.xlane.f32.xlu0 %v758_v30 }
 0x1de   :  { %767 = vadd.xlane.f32.xlu0 %v766_v56 }
 0x1df   :  { %944 = shalt.err (!%p941_p0)
}
 0x1e0   :  { %s973_s18 = smov 64   ;;  %s974_s19 = smov 4   ;;  %v770_v0 = vld [vmem:[%s1660_s4] sm:$0x3] }
 0x1e1   :  { %793 = dma.vmem_to_hbm [thread:$0]  %s788_s16, 128, %s1659_s3, [#allocation4], %s973_s18, %s973_s18, %s974_s19  }
 0x1e2   :  { %v774_v7 = vld [vmem:[%s1661_s5] sm:$0x3] }
 0x25f   :  { %v662_v54 = vpop.xlane.xlu0 %661 }
 0x261   :  { %v670_v1 = vpop.xlane.xlu1 %669 }
 0x263   :  { %v760_v20 = vpop.xlane.xlu0 %759 }
 0x264   :  { %v761_v2 = vadd.f32 %v760_v20, %v662_v54 }
 0x266   :  { %v771_v55 = vadd.f32 %v770_v0, %v761_v2 }
 0x267   :  { %v768_v3 = vpop.xlane.xlu0 %767 }
 0x268   :  { %773 = vst.msk [vmem:[%s1660_s4] sm:$0x3] %vm57_vm6, %v771_v55  ;;  %v769_v6 = vadd.f32 %v768_v3, %v670_v1 }
 0x26a   :  { %v775_v4 = vadd.f32 %v774_v7, %v769_v6 }
 0x26c   :  { %776 = vst.msk [vmem:[%s1661_s5] sm:$0x3] %vm57_vm6, %v775_v4 }
 0x26d   :  { %957 = dma.done.wait [#allocation4], 128  }
 0x26e   :  { %958 = vsyncadd [#allocation4], 4294967168 }
 0x26f   :  { %805 = vsyncpa [#allocation3], 1 }
 0x270   :  { %806 = vsyncpa [#allocation6], 1 }
 0x271   :  { %807 = vsyncpa [#allocation4], 1 }

</bundles_post_ra>
